<compile_context>
chip_gen: v7x
topology: tpu7x:2x2x1
jax: 0.10.0
libtpu: 0.0.40
codegen_flags: <defaults>
</compile_context>

<pallas_src>
import math
import jax
import jax.numpy as jnp
from jax.experimental import pallas as pl
from jax.experimental.pallas import tpu as pltpu


OBS_DIMS = 261
OBS_MXU = 256             # lane-aligned part of the obs contraction (MXU)
OBS_TAIL = OBS_DIMS - OBS_MXU   # 5 columns done as VPU broadcast FMAs
LATENT_DIMS = 2
HIDDEN = 100
HIDDEN_PAD = 128          # lane-width-padded hidden size (zero-padded weights)
FEATURES_DIM = 18
HEAD_W = 2 * FEATURES_DIM     # fused decoder head: [mean | logsigma] = 36
SIDE_W = LATENT_DIMS + FEATURES_DIM   # packed [skill | eps] = 20
OUT_W = 3 * FEATURES_DIM      # output slab: [mean | sigma | next] = 54
MAX_TB = 2048             # batch tile cap (multiple of 8)

LOG_SIG_MIN = math.log(0.4)
LOG_SIG_MAX = math.log(10.0)


def _round_up(x, m):
    return ((x + m - 1) // m) * m


def _cores_per_chip():
    try:
        return max(1, int(getattr(jax.devices()[0], "num_cores", 1)))
    except Exception:
        return 1


def _vmem_limit_bytes(tb):
    lane = 128
    pad = lambda c: _round_up(c, lane)
    # double-buffered per-tile streams (lane-padded f32)
    streams = 2 * tb * (pad(OBS_DIMS) + pad(SIDE_W) + pad(OUT_W)) * 4
    # VMEM-resident weights (x2 for pipelining buffers), generous estimate
    weights = 2 * 4 * (OBS_MXU * HIDDEN_PAD + 2 * 8 * HIDDEN_PAD
                       + HIDDEN_PAD * pad(HEAD_W) + 3 * 8 * pad(HEAD_W))
    est = streams + weights + (4 << 20)          # + headroom for internal scratch
    return int(min(max(est, 32 << 20), 48 << 20))  # safe on v5e/v6e/v7x


# ----------------------------------------------------------------------------
# kernel
# ----------------------------------------------------------------------------
def _skill_dynamics_kernel(
    obs_ref, side_ref,
    w1a_ref, w1b_ref, b1_ref,
    w2h_ref, b2h_ref, whz_ref,
    out_ref,
):
    # ---- layer 1: 256-wide MXU pass + 5 VPU broadcast FMAs + relu ----------
    h = jnp.dot(obs_ref[:, :OBS_MXU], w1a_ref[...],
                preferred_element_type=jnp.float32) + b1_ref[...]
    for j in range(OBS_TAIL):
        h = h + obs_ref[:, OBS_MXU + j:OBS_MXU + j + 1] * w1b_ref[j:j + 1, :]
    h = jnp.maximum(h, 0.0)

    # ---- folded decoder heads: relu(h) @ (W2 @ [Wm|Wl]) + (b2@[Wm|Wl]+[bm|bl])
    heads = jnp.dot(h, w2h_ref[...], preferred_element_type=jnp.float32) + b2h_ref[...]

    # ---- K=2 skill contraction on the VPU (broadcast FMAs) -----------------
    heads = (heads
             + side_ref[:, 0:1] * whz_ref[0:1, :]
             + side_ref[:, 1:2] * whz_ref[1:2, :])

    mean = heads[:, :FEATURES_DIM]
    logsig = jnp.clip(heads[:, FEATURES_DIM:HEAD_W], LOG_SIG_MIN, LOG_SIG_MAX)
    sigma = jnp.exp(logsig)          # clamp-before-exp == clamp(exp, 0.4, 10)
    eps = side_ref[:, LATENT_DIMS:LATENT_DIMS + FEATURES_DIM]
    nxt = mean + sigma * eps

    # single assembled slab store: [mean | sigma | next]
    out_ref[...] = jnp.concatenate([mean, sigma, nxt], axis=-1)


# ----------------------------------------------------------------------------
# one-time weight preparation (hoisted out of the per-call forward)
# ----------------------------------------------------------------------------
def prepare_params(params, compute_dtype=jnp.float32):
    """Pads/folds weights once. `compute_dtype=jnp.bfloat16` enables a bf16
    matmul path (only worthwhile if the caller also supplies bf16 obs)."""
    w1p = jnp.zeros((OBS_DIMS, HIDDEN_PAD), jnp.float32).at[:, :HIDDEN].set(params["w1"])
    w1a = w1p[:OBS_MXU]                                              # (256, 128)
    w1b = jnp.zeros((8, HIDDEN_PAD), jnp.float32).at[:OBS_TAIL].set(w1p[OBS_MXU:])
    b1 = jnp.zeros((1, HIDDEN_PAD), jnp.float32).at[:, :HIDDEN].set(params["b1"])

    w2p = jnp.zeros((HIDDEN_PAD, FEATURES_DIM), jnp.float32).at[:HIDDEN].set(params["w2"])
    whs = jnp.concatenate([params["wm_s"], params["wl_s"]], axis=1)  # (18, 36)
    whz = jnp.concatenate([params["wm_z"], params["wl_z"]], axis=1)  # (2, 36)
    bh = jnp.concatenate([params["bm"], params["bl"]], axis=1)       # (1, 36)

    w2h = w2p @ whs                                                  # (128, 36)
    b2h = params["b2"] @ whs + bh                                    # (1, 36)

    return {
        "w1a": w1a.astype(compute_dtype),
        "w1b": w1b.astype(compute_dtype),
        "b1": b1,
        "w2h": w2h.astype(compute_dtype),
        "b2h": b2h,
        "whz": whz,
    }


# ----------------------------------------------------------------------------
# forward
# ----------------------------------------------------------------------------
def skill_dynamics_forward(obs, skill, eps, prepared, *, tb=None):
    """obs: (B, 261), skill: (B, 2), eps: (B, 18) ~ N(0,1), all f32.

    Returns (de_mean, de_sigma, predicted_next_state), each (B, 18) f32.
    `prepared` comes from prepare_params(params).
    """
    B = obs.shape[0]

    if tb is None:
        tb = min(MAX_TB, _round_up(B, 8))
        nc = _cores_per_chip()
        if nc > 1 and B > 8:
            # keep >=2 grid steps so the "parallel" batch axis shards across TCs
            tb = min(tb, max(8, _round_up(-(-B // nc), 8)))
    assert tb % 8 == 0

    side = jnp.concatenate([skill.astype(jnp.float32), eps.astype(jnp.float32)],
                           axis=1)                                    # (B, 20)

    bp = _round_up(B, tb)
    if bp != B:
        pad = bp - B
        obs = jnp.pad(obs, ((0, pad), (0, 0)))
        side = jnp.pad(side, ((0, pad), (0, 0)))
    grid = (bp // tb,)

    batch_spec = lambda feat: pl.BlockSpec((tb, feat), lambda i: (i, 0))
    const_spec = lambda shape: pl.BlockSpec(shape, lambda i: (0, 0))

    in_specs = [
        batch_spec(OBS_DIMS),                            # obs
        batch_spec(SIDE_W),                              # [skill | eps]
        const_spec((OBS_MXU, HIDDEN_PAD)),               # w1a
        const_spec((8, HIDDEN_PAD)),                     # w1b (5 real rows)
        const_spec((1, HIDDEN_PAD)),                     # b1
        const_spec((HIDDEN_PAD, HEAD_W)),                # w2h (folded)
        const_spec((1, HEAD_W)),                         # b2h (folded)
        const_spec((LATENT_DIMS, HEAD_W)),               # whz
    ]
    out_specs = pl.BlockSpec((tb, OUT_W), lambda i: (i, 0))
    out_shape = jax.ShapeDtypeStruct((bp, OUT_W), jnp.float32)

    flops = 2 * bp * (OBS_MXU * HIDDEN_PAD + OBS_TAIL * HIDDEN_PAD
                      + HIDDEN_PAD * HEAD_W + LATENT_DIMS * HEAD_W)
    weight_bytes = 4 * (OBS_MXU * HIDDEN_PAD + 8 * HIDDEN_PAD + HIDDEN_PAD
                        + HIDDEN_PAD * HEAD_W + HEAD_W + LATENT_DIMS * HEAD_W)
    bytes_accessed = 4 * bp * (OBS_DIMS + SIDE_W + OUT_W) + weight_bytes

    out = pl.pallas_call(
        _skill_dynamics_kernel,
        out_shape=out_shape,
        grid=grid,
        in_specs=in_specs,
        out_specs=out_specs,
        compiler_params=pltpu.CompilerParams(
            dimension_semantics=("parallel",),
            vmem_limit_bytes=_vmem_limit_bytes(tb)),
        cost_estimate=pl.CostEstimate(
            flops=flops,
            transcendentals=bp * FEATURES_DIM,
            bytes_accessed=bytes_accessed),
    )(obs, side,
      prepared["w1a"], prepared["w1b"], prepared["b1"],
      prepared["w2h"], prepared["b2h"], prepared["whz"])

    de_mean = out[:B, 0:FEATURES_DIM]
    de_sigma = out[:B, FEATURES_DIM:2 * FEATURES_DIM]
    pred_next = out[:B, 2 * FEATURES_DIM:3 * FEATURES_DIM]
    return de_mean, de_sigma, pred_next


# ----------------------------------------------------------------------------
# parameter init (matches torch: xavier_uniform_ weights, default Linear bias)
# ----------------------------------------------------------------------------
def _xavier_uniform(key, fan_in, fan_out):
    bound = math.sqrt(6.0 / (fan_in + fan_out))
    return jax.random.uniform(key, (fan_in, fan_out), jnp.float32, -bound, bound)


def _linear_bias(key, fan_in, fan_out):
    bound = 1.0 / math.sqrt(fan_in)
    return jax.random.uniform(key, (1, fan_out), jnp.float32, -bound, bound)


def init_params(key):
    ks = jax.random.split(key, 8)
    cat_dim = FEATURES_DIM + LATENT_DIMS

    w1 = _xavier_uniform(ks[0], OBS_DIMS, HIDDEN)
    b1 = _linear_bias(ks[1], OBS_DIMS, HIDDEN)
    w2 = _xavier_uniform(ks[2], HIDDEN, FEATURES_DIM)
    b2 = _linear_bias(ks[3], HIDDEN, FEATURES_DIM)

    wm = _xavier_uniform(ks[4], cat_dim, FEATURES_DIM)   # de_mean weight, (20, 18)
    bm = _linear_bias(ks[5], cat_dim, FEATURES_DIM)
    wl = _xavier_uniform(ks[6], cat_dim, FEATURES_DIM)   # de_logsigma weight, (20, 18)
    bl = _linear_bias(ks[7], cat_dim, FEATURES_DIM)

    return {
        "w1": w1, "b1": b1,
        "w2": w2, "b2": b2,
        "wm_s": wm[:FEATURES_DIM, :], "wm_z": wm[FEATURES_DIM:, :], "bm": bm,
        "wl_s": wl[:FEATURES_DIM, :], "wl_z": wl[FEATURES_DIM:, :], "bl": bl,
    }


def _reference(obs, skill, eps, p):
    h = jnp.maximum(obs @ p["w1"] + p["b1"], 0.0)
    enc = h @ p["w2"] + p["b2"]
    x = jnp.concatenate([enc, skill], axis=-1)
    wm = jnp.concatenate([p["wm_s"], p["wm_z"]], axis=0)
    wl = jnp.concatenate([p["wl_s"], p["wl_z"]], axis=0)
    mean = x @ wm + p["bm"]
    sigma = jnp.clip(jnp.exp(x @ wl + p["bl"]), 0.4, 10.0)
    return mean, sigma, mean + sigma * eps


if __name__ == "__main__":
    key = jax.random.PRNGKey(0)
    k_param, k_obs, k_skill, k_eps = jax.random.split(key, 4)
    params = init_params(k_param)
    prepared = prepare_params(params)           # one-time weight prep

    # small default batch
    B = 4
    obs = jax.random.normal(k_obs, (B, OBS_DIMS), jnp.float32)
    skill = jax.random.normal(k_skill, (B, LATENT_DIMS), jnp.float32)
    eps = jax.random.normal(k_eps, (B, FEATURES_DIM), jnp.float32)

    de_mean, de_sigma, pred_next = skill_dynamics_forward(obs, skill, eps, prepared)
    jax.block_until_ready((de_mean, de_sigma, pred_next))

    r_mean, r_sigma, r_next = _reference(obs, skill, eps, params)
    assert jnp.allclose(de_mean, r_mean, atol=1e-4, rtol=1e-4)
    assert jnp.allclose(de_sigma, r_sigma, atol=1e-4, rtol=1e-4)
    assert jnp.allclose(pred_next, r_next, atol=1e-4, rtol=1e-4)

    # exercise padding + a multi-tile grid (B not a tile multiple, tb forced small)
    B2 = 12
    obs2 = jax.random.normal(k_obs, (B2, OBS_DIMS), jnp.float32)
    skill2 = jax.random.normal(k_skill, (B2, LATENT_DIMS), jnp.float32)
    eps2 = jax.random.normal(k_eps, (B2, FEATURES_DIM), jnp.float32)
    m2, s2, n2 = skill_dynamics_forward(obs2, skill2, eps2, prepared, tb=8)
    jax.block_until_ready((m2, s2, n2))
    rm2, rs2, rn2 = _reference(obs2, skill2, eps2, params)
    assert jnp.allclose(m2, rm2, atol=1e-4, rtol=1e-4)
    assert jnp.allclose(s2, rs2, atol=1e-4, rtol=1e-4)
    assert jnp.allclose(n2, rn2, atol=1e-4, rtol=1e-4)

    print("KERNEL_OK")
</pallas_src>

<mosaic_0001>
module attributes {stable_mosaic.version = 11 : i64} {
  func.func @_skill_dynamics_kernel(%arg0: i32, %arg1: memref<8x261xf32, #tpu.memory_space<vmem>>, %arg2: memref<8x20xf32, #tpu.memory_space<vmem>>, %arg3: memref<256x128xf32, #tpu.memory_space<vmem>>, %arg4: memref<8x128xf32, #tpu.memory_space<vmem>>, %arg5: memref<1x128xf32, #tpu.memory_space<vmem>>, %arg6: memref<128x36xf32, #tpu.memory_space<vmem>>, %arg7: memref<1x36xf32, #tpu.memory_space<vmem>>, %arg8: memref<2x36xf32, #tpu.memory_space<vmem>>, %arg9: memref<8x54xf32, #tpu.memory_space<vmem>>) attributes {dimension_semantics = [#tpu.dimension_semantics<parallel>], iteration_bounds = array<i64: 1>, scalar_prefetch = 0 : i64, scratch_operands = 0 : i64, tpu.core_type = #tpu.core_type<tc>, window_params = [{transform_indices = @transform_0, window_bounds = array<i64: 8, 261>}, {transform_indices = @transform_1, window_bounds = array<i64: 8, 20>}, {pipeline_mode = #tpu.pipeline_mode<synchronous>, transform_indices = @transform_2, window_bounds = array<i64: 256, 128>}, {pipeline_mode = #tpu.pipeline_mode<synchronous>, transform_indices = @transform_3, window_bounds = array<i64: 8, 128>}, {pipeline_mode = #tpu.pipeline_mode<synchronous>, transform_indices = @transform_4, window_bounds = array<i64: 1, 128>}, {pipeline_mode = #tpu.pipeline_mode<synchronous>, transform_indices = @transform_5, window_bounds = array<i64: 128, 36>}, {pipeline_mode = #tpu.pipeline_mode<synchronous>, transform_indices = @transform_6, window_bounds = array<i64: 1, 36>}, {pipeline_mode = #tpu.pipeline_mode<synchronous>, transform_indices = @transform_7, window_bounds = array<i64: 2, 36>}, {transform_indices = @transform_8, window_bounds = array<i64: 8, 54>}]} {
    %c0 = arith.constant 0 : index
    %c0_0 = arith.constant 0 : index
    %0 = vector.load %arg1[%c0, %c0_0] : memref<8x261xf32, #tpu.memory_space<vmem>>, vector<8x256xf32>
    %c0_1 = arith.constant 0 : index
    %c0_2 = arith.constant 0 : index
    %1 = vector.load %arg3[%c0_1, %c0_2] : memref<256x128xf32, #tpu.memory_space<vmem>>, vector<256x128xf32>
    %cst = arith.constant dense<0.000000e+00> : vector<8x128xf32>
    %2 = tpu.matmul %0, %1, %cst {dimension_numbers = #tpu.dot_dimension_numbers<[1], [0], [0], [1], [0, 0, 1, 1], [], []>} : vector<8x256xf32>, vector<256x128xf32>, vector<8x128xf32> -> vector<8x128xf32>
    %c0_3 = arith.constant 0 : index
    %c0_4 = arith.constant 0 : index
    %3 = vector.load %arg5[%c0_3, %c0_4] : memref<1x128xf32, #tpu.memory_space<vmem>>, vector<1x128xf32>
    %4 = vector.broadcast %3 : vector<1x128xf32> to vector<8x128xf32>
    %5 = arith.addf %2, %4 : vector<8x128xf32>
    %c0_5 = arith.constant 0 : index
    %c256 = arith.constant 256 : index
    %6 = vector.load %arg1[%c0_5, %c256] : memref<8x261xf32, #tpu.memory_space<vmem>>, vector<8x1xf32>
    %c0_6 = arith.constant 0 : index
    %c0_7 = arith.constant 0 : index
    %7 = vector.load %arg4[%c0_6, %c0_7] : memref<8x128xf32, #tpu.memory_space<vmem>>, vector<1x128xf32>
    %8 = vector.broadcast %6 : vector<8x1xf32> to vector<8x128xf32>
    %9 = vector.broadcast %7 : vector<1x128xf32> to vector<8x128xf32>
    %10 = arith.mulf %8, %9 : vector<8x128xf32>
    %11 = arith.addf %5, %10 : vector<8x128xf32>
    %c0_8 = arith.constant 0 : index
    %c257 = arith.constant 257 : index
    %12 = vector.load %arg1[%c0_8, %c257] : memref<8x261xf32, #tpu.memory_space<vmem>>, vector<8x1xf32>
    %c1 = arith.constant 1 : index
    %c0_9 = arith.constant 0 : index
    %13 = vector.load %arg4[%c1, %c0_9] : memref<8x128xf32, #tpu.memory_space<vmem>>, vector<1x128xf32>
    %14 = vector.broadcast %12 : vector<8x1xf32> to vector<8x128xf32>
    %15 = vector.broadcast %13 : vector<1x128xf32> to vector<8x128xf32>
    %16 = arith.mulf %14, %15 : vector<8x128xf32>
    %17 = arith.addf %11, %16 : vector<8x128xf32>
    %c0_10 = arith.constant 0 : index
    %c258 = arith.constant 258 : index
    %18 = vector.load %arg1[%c0_10, %c258] : memref<8x261xf32, #tpu.memory_space<vmem>>, vector<8x1xf32>
    %c2 = arith.constant 2 : index
    %c0_11 = arith.constant 0 : index
    %19 = vector.load %arg4[%c2, %c0_11] : memref<8x128xf32, #tpu.memory_space<vmem>>, vector<1x128xf32>
    %20 = vector.broadcast %18 : vector<8x1xf32> to vector<8x128xf32>
    %21 = vector.broadcast %19 : vector<1x128xf32> to vector<8x128xf32>
    %22 = arith.mulf %20, %21 : vector<8x128xf32>
    %23 = arith.addf %17, %22 : vector<8x128xf32>
    %c0_12 = arith.constant 0 : index
    %c259 = arith.constant 259 : index
    %24 = vector.load %arg1[%c0_12, %c259] : memref<8x261xf32, #tpu.memory_space<vmem>>, vector<8x1xf32>
    %c3 = arith.constant 3 : index
    %c0_13 = arith.constant 0 : index
    %25 = vector.load %arg4[%c3, %c0_13] : memref<8x128xf32, #tpu.memory_space<vmem>>, vector<1x128xf32>
    %26 = vector.broadcast %24 : vector<8x1xf32> to vector<8x128xf32>
    %27 = vector.broadcast %25 : vector<1x128xf32> to vector<8x128xf32>
    %28 = arith.mulf %26, %27 : vector<8x128xf32>
    %29 = arith.addf %23, %28 : vector<8x128xf32>
    %c0_14 = arith.constant 0 : index
    %c260 = arith.constant 260 : index
    %30 = vector.load %arg1[%c0_14, %c260] : memref<8x261xf32, #tpu.memory_space<vmem>>, vector<8x1xf32>
    %c4 = arith.constant 4 : index
    %c0_15 = arith.constant 0 : index
    %31 = vector.load %arg4[%c4, %c0_15] : memref<8x128xf32, #tpu.memory_space<vmem>>, vector<1x128xf32>
    %32 = vector.broadcast %30 : vector<8x1xf32> to vector<8x128xf32>
    %33 = vector.broadcast %31 : vector<1x128xf32> to vector<8x128xf32>
    %34 = arith.mulf %32, %33 : vector<8x128xf32>
    %35 = arith.addf %29, %34 : vector<8x128xf32>
    %cst_16 = arith.constant 0.000000e+00 : f32
    %36 = vector.broadcast %cst_16 : f32 to vector<8x128xf32>
    %37 = arith.maximumf %35, %36 : vector<8x128xf32>
    %c0_17 = arith.constant 0 : index
    %c0_18 = arith.constant 0 : index
    %38 = vector.load %arg6[%c0_17, %c0_18] : memref<128x36xf32, #tpu.memory_space<vmem>>, vector<128x36xf32>
    %cst_19 = arith.constant dense<0.000000e+00> : vector<8x36xf32>
    %39 = tpu.matmul %37, %38, %cst_19 {dimension_numbers = #tpu.dot_dimension_numbers<[1], [0], [0], [1], [0, 0, 1, 1], [], []>} : vector<8x128xf32>, vector<128x36xf32>, vector<8x36xf32> -> vector<8x36xf32>
    %c0_20 = arith.constant 0 : index
    %c0_21 = arith.constant 0 : index
    %40 = vector.load %arg7[%c0_20, %c0_21] : memref<1x36xf32, #tpu.memory_space<vmem>>, vector<1x36xf32>
    %41 = vector.broadcast %40 : vector<1x36xf32> to vector<8x36xf32>
    %42 = arith.addf %39, %41 : vector<8x36xf32>
    %c0_22 = arith.constant 0 : index
    %c0_23 = arith.constant 0 : index
    %43 = vector.load %arg2[%c0_22, %c0_23] : memref<8x20xf32, #tpu.memory_space<vmem>>, vector<8x1xf32>
    %c0_24 = arith.constant 0 : index
    %c0_25 = arith.constant 0 : index
    %44 = vector.load %arg8[%c0_24, %c0_25] : memref<2x36xf32, #tpu.memory_space<vmem>>, vector<1x36xf32>
    %45 = vector.broadcast %43 : vector<8x1xf32> to vector<8x36xf32>
    %46 = vector.broadcast %44 : vector<1x36xf32> to vector<8x36xf32>
    %47 = arith.mulf %45, %46 : vector<8x36xf32>
    %48 = arith.addf %42, %47 : vector<8x36xf32>
    %c0_26 = arith.constant 0 : index
    %c1_27 = arith.constant 1 : index
    %49 = vector.load %arg2[%c0_26, %c1_27] : memref<8x20xf32, #tpu.memory_space<vmem>>, vector<8x1xf32>
    %c1_28 = arith.constant 1 : index
    %c0_29 = arith.constant 0 : index
    %50 = vector.load %arg8[%c1_28, %c0_29] : memref<2x36xf32, #tpu.memory_space<vmem>>, vector<1x36xf32>
    %51 = vector.broadcast %49 : vector<8x1xf32> to vector<8x36xf32>
    %52 = vector.broadcast %50 : vector<1x36xf32> to vector<8x36xf32>
    %53 = arith.mulf %51, %52 : vector<8x36xf32>
    %54 = arith.addf %48, %53 : vector<8x36xf32>
    %55 = vector.extract_strided_slice %54 {offsets = [0, 0], sizes = [8, 18], strides = [1, 1]} : vector<8x36xf32> to vector<8x18xf32>
    %56 = vector.extract_strided_slice %54 {offsets = [0, 18], sizes = [8, 18], strides = [1, 1]} : vector<8x36xf32> to vector<8x18xf32>
    %cst_30 = arith.constant -0.91629076 : f32
    %cst_31 = arith.constant 2.30258512 : f32
    %57 = vector.broadcast %cst_30 : f32 to vector<8x18xf32>
    %58 = arith.maximumf %57, %56 : vector<8x18xf32>
    %59 = vector.broadcast %cst_31 : f32 to vector<8x18xf32>
    %60 = arith.minimumf %59, %58 : vector<8x18xf32>
    %61 = math.exp %60 : vector<8x18xf32>
    %c0_32 = arith.constant 0 : index
    %c2_33 = arith.constant 2 : index
    %62 = vector.load %arg2[%c0_32, %c2_33] : memref<8x20xf32, #tpu.memory_space<vmem>>, vector<8x18xf32>
    %63 = arith.mulf %61, %62 : vector<8x18xf32>
    %64 = arith.addf %55, %63 : vector<8x18xf32>
    %65 = tpu.concatenate %55, %61, %64 in 1 : vector<8x18xf32>, vector<8x18xf32>, vector<8x18xf32> -> vector<8x54xf32>
    %c0_34 = arith.constant 0 : index
    %c0_35 = arith.constant 0 : index
    %66 = vector.load %arg9[%c0_34, %c0_35] : memref<8x54xf32, #tpu.memory_space<vmem>>, vector<8x54xf32>
    tpu.vector_store %arg9[%c0_34, %c0_35], %65 {strides = array<i32>} : memref<8x54xf32, #tpu.memory_space<vmem>>, vector<8x54xf32>,
    return
  }
  func.func @transform_0(%arg0: i32) -> (i32, i32) {
    %c0_i32 = arith.constant 0 : i32
    %c0_i32_0 = arith.constant 0 : i32
    return %arg0, %c0_i32 : i32, i32
  }
  func.func @transform_1(%arg0: i32) -> (i32, i32) {
    %c0_i32 = arith.constant 0 : i32
    %c0_i32_0 = arith.constant 0 : i32
    return %arg0, %c0_i32 : i32, i32
  }
  func.func @transform_2(%arg0: i32) -> (i32, i32) {
    %c0_i32 = arith.constant 0 : i32
    %c0_i32_0 = arith.constant 0 : i32
    %c0_i32_1 = arith.constant 0 : i32
    return %c0_i32, %c0_i32_0 : i32, i32
  }
  func.func @transform_3(%arg0: i32) -> (i32, i32) {
    %c0_i32 = arith.constant 0 : i32
    %c0_i32_0 = arith.constant 0 : i32
    %c0_i32_1 = arith.constant 0 : i32
    return %c0_i32, %c0_i32_0 : i32, i32
  }
  func.func @transform_4(%arg0: i32) -> (i32, i32) {
    %c0_i32 = arith.constant 0 : i32
    %c0_i32_0 = arith.constant 0 : i32
    %c0_i32_1 = arith.constant 0 : i32
    return %c0_i32, %c0_i32_0 : i32, i32
  }
  func.func @transform_5(%arg0: i32) -> (i32, i32) {
    %c0_i32 = arith.constant 0 : i32
    %c0_i32_0 = arith.constant 0 : i32
    %c0_i32_1 = arith.constant 0 : i32
    return %c0_i32, %c0_i32_0 : i32, i32
  }
  func.func @transform_6(%arg0: i32) -> (i32, i32) {
    %c0_i32 = arith.constant 0 : i32
    %c0_i32_0 = arith.constant 0 : i32
    %c0_i32_1 = arith.constant 0 : i32
    return %c0_i32, %c0_i32_0 : i32, i32
  }
  func.func @transform_7(%arg0: i32) -> (i32, i32) {
    %c0_i32 = arith.constant 0 : i32
    %c0_i32_0 = arith.constant 0 : i32
    %c0_i32_1 = arith.constant 0 : i32
    return %c0_i32, %c0_i32_0 : i32, i32
  }
  func.func @transform_8(%arg0: i32) -> (i32, i32) {
    %c0_i32 = arith.constant 0 : i32
    %c0_i32_0 = arith.constant 0 : i32
    return %arg0, %c0_i32 : i32, i32
  }
}

</mosaic_0001>

<bundles_post_ra>
// kernel: tpu_custom_call.1
= control target key start
LH: loop header
LB: loop body
LE: loop exit
PB: predicated region body
PF: predicated region fallthrough
CT: control target
= control target key end

     0   :  { %13 = vsyncpa [#allocation3], 0  ;;  %s777_s0 = inlined_call_operand.vmem [shape: f32[8,261], index: 0, kind: input, shape index: {}]   ;;  %s778_s1 = inlined_call_operand.vmem [shape: f32[8,20], index: 1, kind: input, shape index: {}]   ;;  %s779_s2 = inlined_call_operand.hbm [shape: f32[256,128], index: 2, kind: input, shape index: {}]   ;;  %s780_s3 = inlined_call_operand.vmem [shape: f32[8,128], index: 3, kind: input, shape index: {}]   ;;  %s781_s4 = inlined_call_operand.vmem [shape: f32[1,128], index: 4, kind: input, shape index: {}]   ;;  %s782_s5 = inlined_call_operand.vmem [shape: f32[128,36], index: 5, kind: input, shape index: {}]   ;;  %s783_s6 = inlined_call_operand.vmem [shape: f32[1,36], index: 6, kind: input, shape index: {}]   ;;  %s784_s7 = inlined_call_operand.vmem [shape: f32[2,36], index: 7, kind: input, shape index: {}]   ;;  %s785_s8 = inlined_call_operand.hbm [shape: f32[8,54], index: 8, kind: output, shape index: {}]  }
   0x1   :  { %14 = vsyncpa [#allocation4], 0  ;;  %s593_s27 = smov [#allocation2]   ;;  %s545_s9 = scalar_lea.hbm %s779_s2, 4096 }
   0x2   :  { %s24_s28 = sshll.u32 %s593_s27, 4  ;;  %p546_p0 = scmp.ne.s32.totalorder %s779_s2, %s545_s9  ;;  %s25_s28 = int_to_ptr.vmem [resolvable:$true] %s24_s28 }
   0x3   :  { %p549_p1 = scmp.lt.u32.totalorder %s545_s9, %s779_s2 }
   0x5   :  { %p551_p2 = pnand %p549_p1, %p546_p0 }
   0x7   :  { %554 = shalt.err (!%p551_p2)
}
   0x8   :  { %s555_s14 = scalar_lea.vmem %s25_s28, 4096  ;;  %p560_p4 = scmp.lt.s32.totalorder %s25_s28, %s25_s28 }
   0x9   :  { %p556_p3 = scmp.ne.s32.totalorder %s25_s28, %s555_s14  ;;  %p561_p5 = scmp.lt.s32.totalorder %s555_s14, %s555_s14 }
   0xb   :  { %p562_p6 = por %p561_p5, %p560_p4 }
   0xd   :  { %p563_p7 = pnand %p562_p6, %p556_p3 }
   0xf   :  { %566 = shalt.err (!%p563_p7)
}
  0x10   :  { %s594_s15 = smov 128   ;;  %s595_s16 = smov 8  }
  0x11   :  { %30 = dma.hbm_to_vmem [thread:$0]  %s779_s2, 4096, %s25_s28, [#allocation3], %s594_s15, %s594_s15, %s595_s16  }
  0x12   :  { %589 = dma.done.wait [#allocation3], 4096  }
  0x13   :  { %590 = vsyncadd [#allocation3], 4294963200  ;;  %v596_v0 = vmov 0   ;;  %v597_v1 = vmov 2   ;;  %v598_v2 = vmov 0.0|0.0   ;;  %v62_v3 = vld [vmem:[#allocation2 + $0x80] sm:$0xff] }
  0x14   :  { %535 = vset.pattern.permute.xlu0 %v596_v0  ;;  %537 = vset.pattern.permute.xlu1 %v597_v1  ;;  %v63_v4 = vld [vmem:[#allocation2 + $0x88] sm:$0xff]  ;;  %v46_v5 = vld [vmem:[#allocation2] sm:$0xff]  ;;  %v64_v8 = vld [vmem:[#allocation2 + $0x90] sm:$0xff]  ;;  %v599_v43 = vmov 1   ;;  %v600_v47 = vmov 3   ;;  %v601_v61 = vmov 4  }
  0x15   :  { %496 = vmatprep.subr.bf16.mxu1 %v598_v2  ;;  %v464_v6 = vpack.c.bf16 %v63_v4, %v62_v3  ;;  %v47_v7 = vld [vmem:[#allocation2 + $0x8] sm:$0xff]  ;;  %v65_v9 = vld [vmem:[#allocation2 + $0x98] sm:$0xff]  ;;  %v48_v12 = vld [vmem:[#allocation2 + $0x10] sm:$0xff]  ;;  %vm602_vm0 = vmmov 0   ;;  %s604_s12 = smov 16   ;;  %vm347_vm1 = vcmask 146432  }
  0x16   :  { %v466_v10 = vpack.c.bf16 %v47_v7, %v46_v5  ;;  %v468_v11 = vpack.c.bf16 %v65_v9, %v64_v8  ;;  %v49_v13 = vld [vmem:[#allocation2 + $0x18] sm:$0xff]  ;;  %v66_v14 = vld [vmem:[#allocation2 + $0xa0] sm:$0xff]  ;;  %v67_v15 = vld [vmem:[#allocation2 + $0xa8] sm:$0xff]  ;;  %s607_s25 = smov [#allocation5]   ;;  %vm349_vm2 = vcmask 293888   ;;  %vm351_vm3 = vcmask 441344  }
  0x17   :  { %465 = vmatprep.subr.bf16.mxu0 %v464_v6  ;;  %v470_v16 = vpack.c.bf16 %v49_v13, %v48_v12  ;;  %v472_v17 = vpack.c.bf16 %v67_v15, %v66_v14  ;;  %v50_v18 = vld [vmem:[#allocation2 + $0x20] sm:$0xff]  ;;  %v51_v19 = vld [vmem:[#allocation2 + $0x28] sm:$0xff]  ;;  %v68_v20 = vld [vmem:[#allocation2 + $0xb0] sm:$0xff]  ;;  %s359_s26 = sshll.u32 %s607_s25, 4  ;;  %s360_s26 = int_to_ptr.vmem [resolvable:$true] %s359_s26 }
  0x18   :  { %467 = vmatpush3.bf16.msra.mxu0 %v466_v10  ;;  %v69_v21 = vld [vmem:[#allocation2 + $0xb8] sm:$0xff]  ;;  %v474_v22 = vpack.c.bf16 %v51_v19, %v50_v18  ;;  %v52_v24 = vld [vmem:[#allocation2 + $0x30] sm:$0xff]  ;;  %v70_v26 = vld [vmem:[#allocation2 + $0xc0] sm:$0xff]  ;;  %v603_v18 = vmov 0.0   ;;  %s567_s27 = scalar_lea.vmem %s360_s26, 128  ;;  %p572_p9 = scmp.lt.s32.totalorder %s360_s26, %s360_s26 }
  0x19   :  { %469 = vmatprep.subr.bf16.mxu0 %v468_v11  ;;  %v476_v23 = vpack.c.bf16 %v69_v21, %v68_v20  ;;  %v53_v25 = vld [vmem:[#allocation2 + $0x38] sm:$0xff]  ;;  %v71_v27 = vld [vmem:[#allocation2 + $0xc8] sm:$0xff]  ;;  %v155_v29 = vld [vmem:[%s777_s0 + $0x10] sm:$0xff]  ;;  %461 = vmatprep.mubr.msk.f32.mxu1 %vm602_vm0, %v603_v18  ;;  %p568_p8 = scmp.ne.s32.totalorder %s360_s26, %s567_s27  ;;  %p573_p10 = scmp.lt.s32.totalorder %s567_s27, %s567_s27 }
  0x1a   :  { %v45_v28 = vld [vmem:[%s777_s0 + $0x8] sm:$0xff]  ;;  %v213_v30 = vld [vmem:[%s782_s5] sm:$0xff]  ;;  %v478_v31 = vpack.c.bf16 %v53_v25, %v52_v24  ;;  %159 = vperm.xlu0 %535, %v155_v29   ;;  %v480_v34 = vpack.c.bf16 %v71_v27, %v70_v26  ;;  %181 = vperm.xlu1 %537, %v155_v29   ;;  %v215_v37 = vld [vmem:[%s782_s5 + $0x10] sm:$0xff] }
  0x1b   :  { %149 = vmatprep.mubr.f32.mxu0 %v45_v28  ;;  %v54_v32 = vld [vmem:[#allocation2 + $0x40] sm:$0xff]  ;;  %v214_v33 = vld [vmem:[%s782_s5 + $0x8] sm:$0xff]  ;;  %v216_v38 = vld [vmem:[%s782_s5 + $0x18] sm:$0xff]  ;;  %p574_p11 = por %p573_p10, %p572_p9 }
  0x1c   :  { %471 = vmatpush3.bf16.msra.mxu0 %v470_v16  ;;  %v55_v35 = vld [vmem:[#allocation2 + $0x48] sm:$0xff]  ;;  %v497_v36 = vpack.c.bf16 %v214_v33, %v213_v30  ;;  %v72_v39 = vld [vmem:[#allocation2 + $0xd0] sm:$0xff]  ;;  %v73_v40 = vld [vmem:[#allocation2 + $0xd8] sm:$0xff]  ;;  %v500_v44 = vpack.c.bf16 %v216_v38, %v215_v37 }
  0x1d   :  { %473 = vmatprep.subr.bf16.mxu0 %v472_v17  ;;  %v482_v41 = vpack.c.bf16 %v55_v35, %v54_v32  ;;  %v56_v42 = vld [vmem:[#allocation2 + $0x50] sm:$0xff]  ;;  %v484_v45 = vpack.c.bf16 %v73_v40, %v72_v39  ;;  %v57_v46 = vld [vmem:[#allocation2 + $0x58] sm:$0xff]  ;;  %v217_v48 = vld [vmem:[%s782_s5 + $0x20] sm:$0xff]  ;;  %p575_p12 = pnand %p574_p11, %p568_p8 }
  0x1e   :  { %498 = vmatpush3.bf16.msra.mxu1 %v497_v36  ;;  %536 = vset.pattern.permute.xlu0 %v599_v43  ;;  %v218_v49 = vld [vmem:[%s782_s5 + $0x28] sm:$0xff]  ;;  %v74_v50 = vld [vmem:[#allocation2 + $0xe0] sm:$0xff]  ;;  %v486_v52 = vpack.c.bf16 %v57_v46, %v56_v42  ;;  %v219_v57 = vld [vmem:[%s782_s5 + $0x30] sm:$0xff] }
  0x1f   :  { %538 = vset.pattern.permute.xlu1 %v600_v47  ;;  %v75_v51 = vld [vmem:[#allocation2 + $0xe8] sm:$0xff]  ;;  %170 = vperm.xlu0 %536, %v155_v29   ;;  %v58_v53 = vld [vmem:[#allocation2 + $0x60] sm:$0xff]  ;;  %v503_v54 = vpack.c.bf16 %v218_v49, %v217_v48  ;;  %v220_v58 = vld [vmem:[%s782_s5 + $0x38] sm:$0xff] }
  0x20   :  { %475 = vmatpush3.bf16.msra.mxu0 %v474_v22  ;;  %192 = vperm.xlu1 %538, %v155_v29   ;;  %v488_v55 = vpack.c.bf16 %v75_v51, %v74_v50  ;;  %v59_v56 = vld [vmem:[#allocation2 + $0x68] sm:$0xff]  ;;  %v76_v59 = vld [vmem:[#allocation2 + $0xf0] sm:$0xff]  ;;  %v77_v60 = vld [vmem:[#allocation2 + $0xf8] sm:$0xff]  ;;  %v506_v63 = vpack.c.bf16 %v220_v58, %v219_v57 }
  0x21   :  { %477 = vmatprep.subr.bf16.mxu0 %v476_v23  ;;  %499 = vmatprep.subr.bf16.mxu1 %v598_v2  ;;  %v490_v62 = vpack.c.bf16 %v59_v56, %v58_v53  ;;  %v492_v1 = vpack.c.bf16 %v77_v60, %v76_v59  ;;  %v60_v3 = vld [vmem:[#allocation2 + $0x70] sm:$0xff]  ;;  %v61_v4 = vld [vmem:[#allocation2 + $0x78] sm:$0xff]  ;;  %v221_v6 = vld [vmem:[%s782_s5 + $0x40] sm:$0xff] }
  0x22   :  { %501 = vmatpush3.bf16.msra.mxu1 %v500_v44  ;;  %v494_v5 = vpack.c.bf16 %v61_v4, %v60_v3  ;;  %v222_v7 = vld [vmem:[%s782_s5 + $0x48] sm:$0xff]  ;;  %v223_v9 = vld [vmem:[%s782_s5 + $0x50] sm:$0xff]  ;;  %v224_v10 = vld [vmem:[%s782_s5 + $0x58] sm:$0xff] }
  0x23   :  { %502 = vmatprep.subr.bf16.mxu1 %v598_v2  ;;  %540 = vset.pattern.permute.xlu0 %v596_v0  ;;  %v44_v0 = vld [vmem:[%s777_s0] sm:$0xff]  ;;  %v509_v8 = vpack.c.bf16 %v222_v7, %v221_v6  ;;  %v512_v11 = vpack.c.bf16 %v224_v10, %v223_v9  ;;  %v226_v13 = vld [vmem:[%s782_s5 + $0x68] sm:$0xff]  ;;  %v227_v15 = vld [vmem:[%s782_s5 + $0x70] sm:$0xff] }
  0x24   :  { %479 = vmatpush3.bf16.msra.mxu0 %v478_v31  ;;  %539 = vset.pattern.permute.xlu1 %v601_v61  ;;  %v225_v12 = vld [vmem:[%s782_s5 + $0x60] sm:$0xff]  ;;  %v228_v16 = vld [vmem:[%s782_s5 + $0x78] sm:$0xff] }
  0x25   :  { %481 = vmatprep.subr.bf16.mxu0 %v480_v34  ;;  %203 = vperm.xlu1 %539, %v155_v29   ;;  %v515_v14 = vpack.c.bf16 %v226_v13, %v225_v12  ;;  %v518_v17 = vpack.c.bf16 %v228_v16, %v227_v15  ;;  %v306_v19 = vld [vmem:[%s778_s1] sm:$0xff] }
  0x26   :  { %504 = vmatpush3.bf16.msra.mxu1 %v503_v54  ;;  %310 = vperm.xlu0 %540, %v306_v19   ;;  %v368_v24 = vld [vmem:[%s781_s4] ss:$0 sm:$0xff]  ;;  %v370_v26 = vld [vmem:[%s780_s3 + $0x1] ss:$0 sm:$0xff]  ;;  %v371_v32 = vld [vmem:[%s780_s3 + $0x2] ss:$0 sm:$0xff] }
  0x27   :  { %505 = vmatprep.subr.bf16.mxu1 %v598_v2  ;;  %v372_v34 = vld [vmem:[%s780_s3 + $0x3] ss:$0 sm:$0xff]  ;;  %v373_v35 = vld [vmem:[%s780_s3 + $0x4] ss:$0 sm:$0xff]  ;;  %v374_v47 = vld [vmem:[%s783_s6] ss:$0 sm:$0xff] }
  0x28   :  { %483 = vmatpush3.bf16.msra.mxu0 %v482_v41  ;;  %v376_v48 = vld [vmem:[%s784_s7 + $0x1] ss:$0 sm:$0xff]  ;;  %s605_s6 = smov 110  }
  0x29   :  { %485 = vmatprep.subr.bf16.mxu0 %v484_v45  ;;  %541 = vset.pattern.permute.xlu1 %v599_v43  ;;  %v375_v45 = vld [vmem:[%s784_s7] ss:$0 sm:$0xff]  ;;  %s606_s7 = smov 36  }
  0x2a   :  { %507 = vmatpush3.bf16.msra.mxu1 %v506_v63  ;;  %321 = vperm.xlu1 %541, %v306_v19  }
  0x2b   :  { %508 = vmatprep.subr.bf16.mxu1 %v598_v2  ;;  %542 = vset.pattern.permute.xlu0 %v599_v43 }
  0x2c   :  { %487 = vmatpush3.bf16.msra.mxu0 %v486_v52 }
  0x2d   :  { %489 = vmatprep.subr.bf16.mxu0 %v488_v55 }
  0x2e   :  { %510 = vmatpush3.bf16.msra.mxu1 %v509_v8  ;;  %334 = vrot.lane.b32.xlu1 %v306_v19, %s604_s12 }
  0x2f   :  { %511 = vmatprep.subr.bf16.mxu1 %v598_v2 }
  0x30   :  { %491 = vmatpush3.bf16.msra.mxu0 %v490_v62 }
  0x31   :  { %493 = vmatprep.subr.bf16.mxu0 %v492_v1 }
  0x32   :  { %513 = vmatpush3.bf16.msra.mxu1 %v512_v11 }
  0x33   :  { %514 = vmatprep.subr.bf16.mxu1 %v598_v2 }
  0x34   :  { %495 = vmatpush3.bf16.msra.mxu0 %v494_v5 }
  0x36   :  { %516 = vmatpush3.bf16.msra.mxu1 %v515_v14 }
  0x37   :  { %150 = vmatmul.mubr.f32.vlgmr.msra.gmra.mrb[0].mxu0 %v44_v0  ;;  %517 = vmatprep.subr.bf16.mxu1 %v598_v2  ;;  %v369_v2 = vld [vmem:[%s780_s3] ss:$0 sm:$0xff] }
  0x3a   :  { %519 = vmatpush3.bf16.msra.mxu1 %v518_v17 }
  0x99   :  { %v160_v20 = vpop.permute.xlu0 %159  ;;  %v182_v21 = vpop.permute.xlu1 %181 }
  0x9a   :  { %v166_v29 = vmul.f32 %v369_v2, %v160_v20  ;;  %v188_v37 = vmul.f32 %v371_v32, %v182_v21 }
  0x9e   :  { %v171_v23 = vpop.permute.xlu0 %170 }
  0x9f   :  { %v193_v27 = vpop.permute.xlu1 %192  ;;  %v177_v31 = vmul.f32 %v370_v26, %v171_v23 }
  0xa0   :  { %v199_v40 = vmul.f32 %v372_v34, %v193_v27 }
  0xa4   :  { %v204_v36 = vpop.permute.xlu1 %203 }
  0xa5   :  { %v210_v41 = vmul.f32 %v373_v35, %v204_v36  ;;  %v311_v46 = vpop.permute.xlu0 %310 }
  0xa6   :  { %v317_v50 = vmul.f32 %v375_v45, %v311_v46 }
  0xa9   :  { %v322_v49 = vpop.permute.xlu1 %321 }
  0xaa   :  { %v328_v54 = vmul.f32 %v376_v48, %v322_v49 }
  0xad   :  { %v335_v60 = vpop.permute.xlu1 %334 }
 0x10a   :  { %v409_v22 = vpop.f32.mrb[0].mxu0 }
 0x10b   :  { %v410_v25 = vpop.f32.mrb[1].mxu0 }
 0x10c   :  { %v411_v28 = vadd.f32 %v410_v25, %v409_v22 }
 0x10e   :  { %v152_v30 = vadd.f32 %v411_v28, %v368_v24 }
 0x110   :  { %v167_v33 = vadd.f32 %v166_v29, %v152_v30 }
 0x112   :  { %v178_v38 = vadd.f32 %v177_v31, %v167_v33 }
 0x114   :  { %v189_v39 = vadd.f32 %v188_v37, %v178_v38 }
 0x116   :  { %v200_v42 = vadd.f32 %v199_v40, %v189_v39 }
 0x118   :  { %v211_v43 = vadd.f32 %v210_v41, %v200_v42 }
 0x11a   :  { %v212_v44 = vmax.f32 %v211_v43, 0.0 }
 0x11c   :  { %462 = vmatmul.mubr.f32.vlgmr.msra.gmra.mrb[0].mxu1 %v212_v44 }
 0x1ef   :  { %v302_v51 = vpop.f32.mrb[0].mxu1 }
 0x1f0   :  { %v303_v52 = vadd.f32 %v374_v47, %v302_v51  ;;  %v463_v53 = vpop.f32.mrb[1].mxu1 }
 0x1f2   :  { %v318_v55 = vadd.f32 %v317_v50, %v303_v52 }
 0x1f4   :  { %v329_v56 = vadd.f32 %v328_v54, %v318_v55 }
 0x1f6   :  { %v330_v57 = vmax.f32 %v329_v56, -0.91629076 }
 0x1f8   :  { %v331_v58 = vmin.f32 %v330_v57, 2.3025851 }
 0x1fa   :  { %v332_v59 = vmul.f32 1.442695, %v331_v58 }
 0x1fc   :  { %543 = vpow2.f32 %v332_v59 }
 0x206   :  { %v544_v61 = vpop.eup %543 }
 0x207   :  { %v337_v62 = vmul.f32 %v544_v61, %v335_v60  ;;  %v348_v3 = vsel %vm347_vm1, %v329_v56, %v544_v61 }
 0x209   :  { %339 = vrot.lane.b32.xlu0 %v337_v62, %s605_s6 }
 0x27b   :  { %v340_v63 = vpop.permute.xlu0 %339 }
 0x27c   :  { %v342_v1 = vadd.f32 %v340_v63, %v329_v56 }
 0x27e   :  { %344 = vrot.lane.b32.xlu1 %v342_v1, %s606_s7 }
 0x2f0   :  { %v345_v4 = vpop.permute.xlu1 %344 }
 0x2f1   :  { %v350_v5 = vsel %vm349_vm2, %v348_v3, %v345_v4 }
 0x2f2   :  { %352 = vst.msk [vmem:[#allocation5] sm:$0xff] %vm351_vm3, %v350_v5 }
 0x2f3   :  { %578 = shalt.err (!%p575_p12)
}
 0x2f4   :  { %s579_s30 = scalar_lea.hbm %s785_s8, 128 }
 0x2f5   :  { %p580_p13 = scmp.ne.s32.totalorder %s785_s8, %s579_s30  ;;  %p583_p0 = scmp.lt.u32.totalorder %s579_s30, %s785_s8 }
 0x2f7   :  { %p585_p1 = pnand %p583_p0, %p580_p13 }
 0x2f9   :  { %588 = shalt.err (!%p585_p1)
}
 0x2fa   :  { %362 = dma.vmem_to_hbm [thread:$0]  %s360_s26, 128, %s785_s8, [#allocation4]  }
 0x2fb   :  { %591 = dma.done.wait [#allocation4], 128  }
 0x2fc   :  { %592 = vsyncadd [#allocation4], 4294967168 }
 0x2fd   :  { %366 = vsyncpa [#allocation3], 1 }
 0x2fe   :  { %367 = vsyncpa [#allocation4], 1 }

</bundles_post_ra>
